<compile_context>
chip_gen: v5e
topology: v5e:2x2
jax: 0.10.0
libtpu: 0.0.40
codegen_flags: <defaults>
</compile_context>

<pallas_src>
import functools
import math

import numpy as np
import jax
import jax.numpy as jnp
from jax.experimental import pallas as pl
from jax.experimental.pallas import tpu as pltpu


# ---------------------------------------------------------------------------
# One-time probe: resolve the hardware lane-rotate direction convention so the
# depthwise taps are shifted the right way regardless of pltpu.roll's sign.
# ---------------------------------------------------------------------------
_ROLL_JNP_LIKE = None


def _roll_is_jnp_like() -> bool:
    """True if pltpu.roll(x, s, axis)[..., j] == x[..., j - s] (jnp.roll convention)."""
    global _ROLL_JNP_LIKE
    if _ROLL_JNP_LIKE is None:
        def probe(x_ref, o_ref):
            o_ref[...] = pltpu.roll(x_ref[...], 1, axis=1)

        x = jnp.tile(jnp.arange(128, dtype=jnp.float32)[None, :], (8, 1))
        y = pl.pallas_call(
            probe, out_shape=jax.ShapeDtypeStruct((8, 128), jnp.float32))(x)
        _ROLL_JNP_LIKE = bool(jax.device_get(y)[0, 1] == 0.0)
    return _ROLL_JNP_LIKE


# ---------------------------------------------------------------------------
# Kernel
# ---------------------------------------------------------------------------
def make_tsc_block_kernel(n_layers: int, kernel_size: int, seg_len: int,
                          pad: int, roll_is_jnp_like: bool):
    """Fused TSCBlock kernel for a static layer count / kernel size."""
    K = kernel_size
    # Per layer: (dw, wf, bias) except the last layer, whose bias is folded
    # into the residual bias in the wrapper -> (dw, wf) only.
    n_layer_refs = 3 * (n_layers - 1) + 2

    def kernel(x_ref, rw_ref, rb_ref, *rest):
        layer_refs = rest[:n_layer_refs]
        out_ref = rest[n_layer_refs]

        dot = functools.partial(jnp.dot, preferred_element_type=jnp.float32)

        x = x_ref[...]                      # (C_in_p, W) f32, W = nb * seg_len
        W = x.shape[-1]

        # Per-tap (lane-shift amount, segment-boundary mask).  The mask zeroes
        # contributions that would cross a batch-segment boundary (this is the
        # Conv1d 'same' zero padding).  Computed once, reused by every layer.
        lane = jax.lax.broadcasted_iota(jnp.int32, (1, W), 1) % seg_len
        taps = []
        for k in range(K):
            off = k - pad                    # source lane = current lane + off
            if off == 0:
                taps.append((0, None))
                continue
            shift = ((-off) if roll_is_jnp_like else off) % W
            src = lane + off
            mask = ((src >= 0) & (src < seg_len)).astype(jnp.float32)
            taps.append((shift, mask))

        # Residual branch: 1x1 conv with BN (and the last TSC layer's bias)
        # pre-folded into (rw, rb).  bf16 operands, f32 accumulation.
        x_res = dot(rw_ref[...], x.astype(jnp.bfloat16)) + rb_ref[...]

        # TSC stack: per layer, depthwise on the VPU (rolled + masked taps,
        # per-channel scale) then ONE MXU matmul for the BN-folded 1x1 conv.
        cur = x
        r = 0
        for i in range(n_layers):
            is_last = (i == n_layers - 1)
            dw = layer_refs[r][...]          # (C_l_p, K) f32 depthwise taps
            wf_ref = layer_refs[r + 1]       # (C_out_p, C_l_p) bf16, BN folded
            b_ref = None if is_last else layer_refs[r + 2]
            r += 2 if is_last else 3

            y = None
            for k, (shift, mask) in enumerate(taps):
                src = cur if mask is None else pltpu.roll(cur, shift, axis=1) * mask
                term = dw[:, k:k + 1] * src
                y = term if y is None else y + term

            z = dot(wf_ref[...], y.astype(jnp.bfloat16))
            if is_last:
                out_ref[...] = jnp.maximum(z + x_res, 0.0)
            else:
                cur = jnp.maximum(z + b_ref[...], 0.0)

    return kernel


# ---------------------------------------------------------------------------
# Wrapper: parameter folding, lane-dense layout, tiling, pallas_call
# ---------------------------------------------------------------------------
def _round_up(v, m):
    return -(-v // m) * m


def _pad2(a, rows, cols):
    return jnp.pad(a, ((0, rows - a.shape[0]), (0, cols - a.shape[1])))


def _fold_params(params, kernel_size, c_in_p, c_out_p):
    """Fold BN into the 1x1 convs; keep depthwise taps separate (VPU side)."""
    res_w, res_b, res_s, res_t = params["res"]
    rw = _pad2(res_s * res_w, c_out_p, c_in_p).astype(jnp.bfloat16)
    rb = res_s * res_b + res_t                               # (C_out, 1) f32

    n_layers = len(params["layers"])
    layer_inputs = []
    ci_p = c_in_p
    for i, (dw_w, dw_b, pw_w, pw_b, s, t) in enumerate(params["layers"]):
        co, ci = pw_w.shape
        assert dw_w.shape[1] == kernel_size
        wf = s * pw_w                                        # BN into pointwise
        bf = s * (pw_w @ dw_b + pw_b) + t                    # dw bias through pw
        dw = jnp.pad(dw_w, ((0, ci_p - ci), (0, 0)))         # (C_l_p, K) f32
        wf = _pad2(wf, c_out_p, ci_p).astype(jnp.bfloat16)
        if i == n_layers - 1:
            rb = rb + bf                  # last layer's bias rides on the residual
            layer_inputs += [dw, wf]
        else:
            layer_inputs += [dw, wf, _pad2(bf, c_out_p, 1)]
        ci_p = c_out_p
    rb = _pad2(rb, c_out_p, 1)
    return rw, rb, layer_inputs


def tsc_block_forward(x, params, *, kernel_size, vmem_act_budget_bytes=None):
    N, C_in, L = x.shape
    K = kernel_size
    assert K % 2 == 1, "only odd kernel sizes supported ('same' padding)"
    pad = (K - 1) // 2
    C_out = params["res"][0].shape[0]
    n_layers = len(params["layers"])

    # bf16 matmul operands -> pad channel dims to the bf16 sublane tile (16).
    c_in_p = _round_up(C_in, 16)
    c_out_p = _round_up(C_out, 16)
    c_max = max(c_in_p, c_out_p)

    rw, rb, layer_inputs = _fold_params(params, K, c_in_p, c_out_p)
    const_inputs = [rw, rb] + layer_inputs

    # ---- generation-aware VMEM plan --------------------------------------
    try:
        info = pltpu.get_tpu_info()
        vmem_physical = int(getattr(info, "vmem_capacity_bytes", 64 << 20))
    except Exception:                                   # conservative fallback
        vmem_physical = 64 << 20
    if vmem_act_budget_bytes is None:
        # ~1/3 of physical VMEM for the per-step activation plan:
        # ~42 MiB on v5e/v6e (128 MiB), ~21 MiB on v7x (64 MiB per TC).
        vmem_act_budget_bytes = max(8 << 20, vmem_physical // 3)

    # Per-batch-element bytes: double-buffered in/out blocks + live f32 temps
    # (x_res, cur, depthwise accumulator, rolled/masked tap, bf16 dot operand).
    per_el_bytes = 4 * L * (2 * c_in_p + 2 * c_out_p + 5 * c_max)
    weight_bytes = 2 * sum(int(a.size) * a.dtype.itemsize for a in const_inputs)

    # Lane-dense activation layout: batch segments packed along the lane axis.
    # Each grid step owns `nb` whole batch segments (nb*L multiple of 128).
    base_nb = 128 // math.gcd(L, 128)
    avail = max(vmem_act_budget_bytes - weight_bytes, per_el_bytes * base_nb)
    nb_cap = max(base_nb, (avail // per_el_bytes) // base_nb * base_nb)
    nb = min(nb_cap, _round_up(N, base_nb))
    if N > base_nb:
        # Guarantee >= 2 grid steps when the batch allows: v7x has 2 TCs and
        # the "parallel" axis only shards if there is more than one step.
        nb = min(nb, max(base_nb, _round_up(-(-N // 2), base_nb)))
    nb = max(nb, base_nb)
    num_steps = -(-N // nb)
    n_pad = num_steps * nb
    lane_tile = nb * L

    per_step_bytes = per_el_bytes * nb + weight_bytes
    vmem_limit = int(min(vmem_physical - (8 << 20),
                         max(32 << 20, 2 * per_step_bytes)))

    xp = jnp.pad(x, ((0, n_pad - N), (0, c_in_p - C_in), (0, 0)))
    x2d = jnp.transpose(xp, (1, 0, 2)).reshape(c_in_p, n_pad * L)

    kernel = make_tsc_block_kernel(n_layers, K, L, pad, _roll_is_jnp_like())

    inputs = [x2d] + const_inputs

    def const_spec(a):                       # full-array block, grid-invariant
        zeros = (0,) * a.ndim
        return pl.BlockSpec(a.shape, lambda s, _z=zeros: _z)

    in_specs = [pl.BlockSpec((c_in_p, lane_tile), lambda s: (0, s))]
    in_specs += [const_spec(a) for a in const_inputs]
    out_spec = pl.BlockSpec((c_out_p, lane_tile), lambda s: (0, s))

    out2d = pl.pallas_call(
        kernel,
        grid=(num_steps,),
        in_specs=in_specs,
        out_specs=out_spec,
        out_shape=jax.ShapeDtypeStruct((c_out_p, n_pad * L), jnp.float32),
        compiler_params=pltpu.CompilerParams(
            dimension_semantics=("parallel",),
            vmem_limit_bytes=vmem_limit),
    )(*inputs)

    out = out2d.reshape(c_out_p, n_pad, L)[:C_out, :N]
    return jnp.transpose(out, (1, 0, 2))


# ---------------------------------------------------------------------------
# Parameter init + pure-NumPy reference (unfolded, mirrors the PyTorch module)
# ---------------------------------------------------------------------------
def init_params(key, n_blocks, kernel_size, c_in, c_out, eps=1e-5):
    keys = iter(jax.random.split(key, 64))

    def nrm(shape, scale):
        return jax.random.normal(next(keys), shape, jnp.float32) * scale

    def bn_affine(c):
        gamma = 1.0 + nrm((c,), 0.1)
        beta = nrm((c,), 0.1)
        mean = nrm((c,), 0.1)
        var = 0.5 + jnp.abs(nrm((c,), 0.1))
        s = gamma / jnp.sqrt(var + eps)
        t = beta - mean * s
        return s.reshape(c, 1), t.reshape(c, 1)

    def tsc_params(ci, co):
        dw_w = nrm((ci, kernel_size), 0.3)   # depthwise conv weight (groups=ci)
        dw_b = nrm((ci, 1), 0.1)
        pw_w = nrm((co, ci), 0.3)            # 1x1 conv weight (groups=1)
        pw_b = nrm((co, 1), 0.1)
        s, t = bn_affine(co)
        return [dw_w, dw_b, pw_w, pw_b, s, t]

    layers = [tsc_params(c_in, c_out)]
    for _ in range(1, n_blocks - 1):
        layers.append(tsc_params(c_out, c_out))
    layers.append(tsc_params(c_out, c_out))

    res_w = nrm((c_out, c_in), 0.3)
    res_b = nrm((c_out, 1), 0.1)
    rs, rt = bn_affine(c_out)
    return {"res": (res_w, res_b, rs, rt), "layers": layers}


def ref_forward(x, params, kernel_size):
    """Pure NumPy reference of TSCBlock.forward (inference-mode BN)."""
    x = np.asarray(x, np.float64)
    pad = (kernel_size - 1) // 2
    res_w, res_b, res_s, res_t = [np.asarray(p, np.float64) for p in params["res"]]

    def pw(a, w, b):
        return np.einsum("oc,ncl->nol", w, a) + b.reshape(1, -1, 1)

    x_res = pw(x, res_w, res_b) * res_s.reshape(1, -1, 1) + res_t.reshape(1, -1, 1)

    cur = x
    n_layers = len(params["layers"])
    for i, lp in enumerate(params["layers"]):
        dw_w, dw_b, pw_w, pw_b, s, t = [np.asarray(p, np.float64) for p in lp]
        N, C, L = cur.shape
        xp = np.pad(cur, ((0, 0), (0, 0), (pad, pad)))
        y = np.zeros_like(cur)
        for k in range(kernel_size):
            y += dw_w[:, k].reshape(1, -1, 1) * xp[:, :, k:k + L]
        y += dw_b.reshape(1, -1, 1)
        z = pw(y, pw_w, pw_b) * s.reshape(1, -1, 1) + t.reshape(1, -1, 1)
        if i < n_layers - 1:
            z = np.maximum(z, 0.0)
        cur = z
    return np.maximum(cur + x_res, 0.0)


if __name__ == "__main__":
    key = jax.random.PRNGKey(0)
    k_x, k_p = jax.random.split(key)

    N, C_in, C_out, L = 2, 4, 8, 16
    kernel_size, n_blocks = 3, 3  # n_groups=1 (default), is_intermediate=False

    x = jax.random.normal(k_x, (N, C_in, L), jnp.float32)
    params = init_params(k_p, n_blocks, kernel_size, C_in, C_out)

    out = jax.block_until_ready(tsc_block_forward(x, params, kernel_size=kernel_size))

    ref = ref_forward(x, params, kernel_size)
    # bf16 matmul operands (f32 accumulation) -> tolerance loosened vs pure-f32.
    np.testing.assert_allclose(np.asarray(out), ref, rtol=5e-2, atol=5e-2)
    print("KERNEL_OK")
</pallas_src>

<mosaic_0001>
module attributes {stable_mosaic.version = 11 : i64} {
  func.func @probe(%arg0: memref<8x128xf32, #tpu.memory_space<vmem>>, %arg1: memref<8x128xf32, #tpu.memory_space<vmem>>) attributes {dimension_semantics = [], scalar_prefetch = 0 : i64, scratch_operands = 0 : i64, tpu.core_type = #tpu.core_type<tc>} {
    %c0 = arith.constant 0 : index
    %c0_0 = arith.constant 0 : index
    %0 = vector.load %arg0[%c0, %c0_0] : memref<8x128xf32, #tpu.memory_space<vmem>>, vector<8x128xf32>
    %c1_i32 = arith.constant 1 : i32
    %1 = tpu.dynamic_rotate %0 by %c1_i32 dim 1 : vector<8x128xf32>, i32 -> vector<8x128xf32>
    %c0_1 = arith.constant 0 : index
    %c0_2 = arith.constant 0 : index
    %2 = vector.load %arg1[%c0_1, %c0_2] : memref<8x128xf32, #tpu.memory_space<vmem>>, vector<8x128xf32>
    tpu.vector_store %arg1[%c0_1, %c0_2], %1 {strides = array<i32>} : memref<8x128xf32, #tpu.memory_space<vmem>>, vector<8x128xf32>,
    return
  }
}

</mosaic_0001>

<bundles_post_ra>
// kernel: tpu_custom_call.1
= control target key start
LH: loop header
LB: loop body
LE: loop exit
PB: predicated region body
PF: predicated region fallthrough
CT: control target
= control target key end

     0   :  { %6 = vsyncpa [#allocation3], 0  ;;  %s118_s0 = inlined_call_operand.hbm [shape: f32[8,128], index: 0, kind: input, shape index: {}]   ;;  %s119_s1 = inlined_call_operand.hbm [shape: f32[8,128], index: 1, kind: output, shape index: {}]  }
   0x1   :  { %7 = vsyncpa [#allocation4], 0  ;;  %s13_s8 = sshll.u32 %s118_s0, 4  ;;  %s99_s9 = smov [#allocation2]   ;;  %s14_s8 = int_to_ptr.hbm [resolvable:$true] %s13_s8 }
   0x2   :  { %s15_s10 = sshll.u32 %s99_s9, 4  ;;  %s16_s10 = int_to_ptr.vmem [resolvable:$true] %s15_s10 }
   0x3   :  { %18 = dma.hbm_to_vmem [thread:$0]  %s14_s8, 128, %s16_s10, [#allocation3]  }
   0x4   :  { %95 = dma.done.wait [#allocation3], 128  }
   0x5   :  { %96 = vsyncadd [#allocation3], 4294967168  ;;  %v23_v0 = vld [vmem:[#allocation2] sm:$0xff]  ;;  %s100_s11 = smov 1   ;;  %s101_s12 = smov [#allocation5]  }
   0x6   :  { %24 = vrot.lane.b32.xlu0 %v23_v0, %s100_s11  ;;  %s32_s13 = sshll.u32 %s101_s12, 4  ;;  %s34_s16 = sshll.u32 %s119_s1, 4  ;;  %s33_s13 = int_to_ptr.vmem [resolvable:$true] %s32_s13  ;;  %s35_s16 = int_to_ptr.hbm [resolvable:$true] %s34_s16 }
  0x78   :  { %v25_v1 = vpop.permute.xlu0 %24 }
  0x79   :  { %26 = vst [vmem:[#allocation5] sm:$0xff] %v25_v1 }
  0x7a   :  { %37 = dma.vmem_to_hbm [thread:$0]  %s33_s13, 128, %s35_s16, [#allocation4]  }
  0x7b   :  { %97 = dma.done.wait [#allocation4], 128  }
  0x7c   :  { %98 = vsyncadd [#allocation4], 4294967168 }
  0x7d   :  { %42 = vsyncpa [#allocation3], 1 }
  0x7e   :  { %43 = vsyncpa [#allocation4], 1 }

</bundles_post_ra>
